<compile_context>
chip_gen: v5e
topology: v5e:2x2
jax: 0.10.0
libtpu: 0.0.40
codegen_flags: <defaults>
</compile_context>

<pallas_src>
import jax
import jax.numpy as jnp
from jax.experimental import pallas as pl
from jax.experimental.pallas import tpu as pltpu

_LANE = 128     # vreg lane width / MXU-friendly last-dim granularity
_SUBLANE = 8    # f32 sublane granularity


def _round_up(n, m):
    return (n + m - 1) // m * m


# ---------------------------------------------------------------------------
# Kernels
# ---------------------------------------------------------------------------
def mlp_kernel(x_ref, w1_ref, b1_ref, w2_ref, b2_ref, o_ref):
    """Fused fc1 -> ReLU -> fc2 with the whole hidden dim resident."""
    # fc1 on the MXU, f32 accumulation; bias-add + ReLU stay in f32 (safe on
    # v5e's f32-only VPU).
    h = jnp.dot(x_ref[...], w1_ref[...], preferred_element_type=jnp.float32)
    h = jnp.maximum(h + b1_ref[...], 0.0)
    # fc2: feed the MXU in the weights' compute dtype, accumulate in f32.
    out = jnp.dot(h.astype(w2_ref.dtype), w2_ref[...],
                  preferred_element_type=jnp.float32)
    o_ref[...] = (out + b2_ref[...]).astype(o_ref.dtype)


def mlp_hidden_split_kernel(x_ref, w1_ref, b1_ref, w2_ref, b2_ref, o_ref,
                            acc_ref):
    """Fused MLP with the hidden dim split over a trailing reduction axis.

    out = sum_j relu(x @ W1[:, j] + b1[j]) @ W2[j, :]  (exact: ReLU is
    elementwise per hidden unit).  Accumulates in an f32 VMEM scratch and only
    stores the output block on the final hidden chunk.
    """
    j = pl.program_id(1)

    @pl.when(j == 0)
    def _():
        acc_ref[...] = jnp.zeros_like(acc_ref)

    h = jnp.dot(x_ref[...], w1_ref[...], preferred_element_type=jnp.float32)
    h = jnp.maximum(h + b1_ref[...], 0.0)
    acc_ref[...] += jnp.dot(h.astype(w2_ref.dtype), w2_ref[...],
                            preferred_element_type=jnp.float32)

    @pl.when(j == pl.num_programs(1) - 1)
    def _():
        o_ref[...] = (acc_ref[...] + b2_ref[...]).astype(o_ref.dtype)


# ---------------------------------------------------------------------------
# Hardware / tiling helpers
# ---------------------------------------------------------------------------
def _vmem_budget_bytes():
    """~75% of per-core VMEM capacity (96 MiB on v5e/v6e, 48 MiB on v7x)."""
    try:
        cap = int(pltpu.get_tpu_info().vmem_capacity_bytes)
    except Exception:
        cap = 64 << 20  # conservative v7x per-TC default
    return max(int(0.75 * cap), 16 << 20)


def _num_tensorcores():
    """Best-effort TensorCore count per chip (2 on v7x, else 1)."""
    try:
        kind = jax.devices()[0].device_kind.lower()
    except Exception:
        return 1
    return 2 if "v7" in kind else 1


def _const_spec(shape, index_map):
    """BlockSpec for a block whose index never changes across the grid:
    request a single pipeline buffer (it is never re-fetched).  Falls back to
    default double-buffering if this Pallas build lacks pipeline_mode."""
    try:
        return pl.BlockSpec(shape, index_map, pipeline_mode=pl.Buffered(1))
    except Exception:
        return pl.BlockSpec(shape, index_map)


def _hidden_chunks(hp):
    """Multiples of 128 that evenly divide hp, descending (hp ... 128)."""
    n = hp // _LANE
    return [(n // k) * _LANE for k in range(1, n + 1) if n % k == 0]


def _tile_bytes(tb, th, dp_in, hp, dp_out, in_bytes, out_bytes, split):
    """Rough per-grid-step VMEM footprint."""
    if not split:
        # Weights/biases Buffered(1) (single copy); x / out double-buffered.
        weights = (dp_in * hp + hp * dp_out) * in_bytes + (hp + dp_out) * 4
        tiles = (2 * tb * dp_in * in_bytes          # double-buffered x tile
                 + 2 * tb * dp_out * out_bytes      # double-buffered out tile
                 + tb * hp * 4                      # f32 hidden intermediate
                 + tb * dp_out * 4)                 # f32 pre-bias output
    else:
        weights = (2 * (dp_in * th + th * dp_out) * in_bytes  # pipelined chunks
                   + 2 * th * 4 + dp_out * 4)                 # b1 chunks + b2
        tiles = (2 * tb * dp_in * in_bytes
                 + 2 * tb * dp_out * out_bytes
                 + tb * th * 4                      # f32 hidden chunk
                 + 2 * tb * dp_out * 4)             # acc scratch + dot result
    return weights + tiles


def _choose_tiling(B, dp_in, hp, dp_out, in_bytes, out_bytes, budget, num_tc,
                   user_tb=None, user_th=None):
    """Return (tb, th, split, steps)."""
    bp_min = _round_up(max(B, 1), _SUBLANE)

    def fits(tb, th, split):
        return _tile_bytes(tb, th, dp_in, hp, dp_out,
                           in_bytes, out_bytes, split) <= budget

    if user_tb is not None:
        if user_tb <= 0 or user_tb % _SUBLANE != 0:
            raise ValueError(
                f"tb must be a positive multiple of {_SUBLANE}, got {user_tb}")
        tb_cands = [user_tb]
    elif bp_min <= 1024:
        # Small/medium batch: single grid step.  Splitting a tiny batch only
        # adds per-step overhead on 1-TC chips and doubles weight HBM traffic
        # on v7x in a weight-bandwidth-bound regime.
        tb_cands = [bp_min] + [c for c in (512, 256) if c < bp_min]
    else:
        tb_cands = [1024, 512, 256]

    th_cands = _hidden_chunks(hp)  # descending, hp ... 128

    tb = th = None
    split = False
    if user_th is not None:
        if user_th % _LANE != 0 or hp % user_th != 0:
            raise ValueError(
                f"hidden_chunk must be a multiple of {_LANE} dividing the "
                f"padded hidden dim {hp}, got {user_th}")
        th, split = user_th, user_th < hp
        for cand in tb_cands:
            if fits(cand, th, split):
                tb = cand
                break
        if tb is None:
            tb = tb_cands[-1]
    else:
        # Prefer the whole-hidden kernel (one MXU pass per weight), VMEM-aware.
        for cand in tb_cands:
            if fits(cand, hp, False):
                tb, th, split = cand, hp, False
                break
        if tb is None:
            # Hidden-dim split bounds resident weights + the f32 intermediate.
            for cand in tb_cands:
                for thc in (th_cands[1:] or th_cands):
                    if fits(cand, thc, True):
                        tb, th, split = cand, thc, True
                        break
                if tb is not None:
                    break
        if tb is None:
            tb, th, split = tb_cands[-1], th_cands[-1], True

    steps = -(-bp_min // tb)
    # v7x: keep the parallel (batch) step count even so both TensorCores get
    # equal work; padding cost is one tile of zero rows at most.
    if user_tb is None and num_tc == 2 and steps > 1 and steps % 2 == 1:
        steps += 1
    return tb, th, split, int(steps)


# ---------------------------------------------------------------------------
# Parameter preparation (hoisted out of the per-call path)
# ---------------------------------------------------------------------------
def prepare_params(w1, b1, w2, b2, *, compute_dtype=jnp.bfloat16):
    """Pad + cast the weights once.  Weights are stored transposed vs torch
    ([in, out]) so the kernel computes x @ W.  Biases stay f32."""
    w1, w2 = jnp.asarray(w1), jnp.asarray(w2)
    b1 = jnp.asarray(b1).reshape(1, -1)
    b2 = jnp.asarray(b2).reshape(1, -1)
    D_in, H = w1.shape
    D_out = w2.shape[1]
    dp_in, hp, dp_out = (_round_up(d, _LANE) for d in (D_in, H, D_out))

    def pad2(a, shape, dtype):
        if a.shape == shape:
            return a.astype(dtype)
        out = jnp.zeros(shape, dtype)
        return out.at[:a.shape[0], :a.shape[1]].set(a.astype(dtype))

    return dict(
        w1=pad2(w1, (dp_in, hp), compute_dtype),
        b1=pad2(b1, (1, hp), jnp.float32),
        w2=pad2(w2, (hp, dp_out), compute_dtype),
        b2=pad2(b2, (1, dp_out), jnp.float32),
        dims=(D_in, H, D_out),
        compute_dtype=jnp.dtype(compute_dtype),
    )


# ---------------------------------------------------------------------------
# Forward
# ---------------------------------------------------------------------------
def ot_map_nn_forward(x, params, *, tb=None, hidden_chunk=None):
    """Pallas implementation of OTMapNN.forward: fc2(relu(fc1(x)))."""
    D_in, H, D_out = params["dims"]
    compute_dtype = params["compute_dtype"]
    w1p, b1p, w2p, b2p = params["w1"], params["b1"], params["w2"], params["b2"]
    dp_in, hp = w1p.shape
    dp_out = w2p.shape[1]

    orig_shape = x.shape
    assert orig_shape[-1] == D_in, (orig_shape, D_in)
    if x.ndim != 2:
        x = x.reshape(-1, D_in)
    B = x.shape[0]
    out_dtype = x.dtype
    in_bytes = jnp.dtype(compute_dtype).itemsize
    out_bytes = jnp.dtype(out_dtype).itemsize

    budget = _vmem_budget_bytes()
    num_tc = _num_tensorcores()
    tb, th, split, steps = _choose_tiling(
        B, dp_in, hp, dp_out, in_bytes, out_bytes, budget, num_tc,
        user_tb=tb, user_th=hidden_chunk)
    bp = steps * tb

    # x: cast + pad only when needed (fast path skips the extra HBM round trip).
    if x.dtype == compute_dtype and bp == B and dp_in == D_in:
        xp = x
    else:
        xp = jnp.zeros((bp, dp_in), compute_dtype).at[:B, :D_in].set(
            x.astype(compute_dtype))

    # VMEM limit: never clamp below the actual footprint estimate.
    vmem_need = _tile_bytes(tb, th, dp_in, hp, dp_out, in_bytes, out_bytes,
                            split)
    vmem_limit = int(max(32 << 20, 1.25 * vmem_need))
    if vmem_need <= budget:
        vmem_limit = min(vmem_limit, max(budget, 32 << 20))

    # Advisory cost estimate for XLA's scheduler.
    weight_bytes = (dp_in * hp + hp * dp_out) * in_bytes + (hp + dp_out) * 4
    flops = 2 * bp * (dp_in * hp + hp * dp_out)
    bytes_accessed = (bp * dp_in * in_bytes
                      + weight_bytes * (steps if split else 1)
                      + bp * dp_out * out_bytes)
    cost = pl.CostEstimate(flops=int(flops), transcendentals=0,
                           bytes_accessed=int(bytes_accessed))

    if not split:
        grid_spec = pltpu.PrefetchScalarGridSpec(
            num_scalar_prefetch=0,
            grid=(steps,),
            in_specs=[
                pl.BlockSpec((tb, dp_in), lambda i: (i, 0)),          # x tile
                _const_spec((dp_in, hp), lambda i: (0, 0)),           # W1
                _const_spec((1, hp), lambda i: (0, 0)),               # b1 (f32)
                _const_spec((hp, dp_out), lambda i: (0, 0)),          # W2
                _const_spec((1, dp_out), lambda i: (0, 0)),           # b2 (f32)
            ],
            out_specs=pl.BlockSpec((tb, dp_out), lambda i: (i, 0)),
        )
        kernel = mlp_kernel
        dim_sem = ("parallel",)
    else:
        grid_spec = pltpu.PrefetchScalarGridSpec(
            num_scalar_prefetch=0,
            grid=(steps, hp // th),
            in_specs=[
                pl.BlockSpec((tb, dp_in), lambda i, j: (i, 0)),       # x tile
                pl.BlockSpec((dp_in, th), lambda i, j: (0, j)),       # W1 chunk
                pl.BlockSpec((1, th), lambda i, j: (0, j)),           # b1 chunk
                pl.BlockSpec((th, dp_out), lambda i, j: (j, 0)),      # W2 chunk
                _const_spec((1, dp_out), lambda i, j: (0, 0)),        # b2 (f32)
            ],
            out_specs=pl.BlockSpec((tb, dp_out), lambda i, j: (i, 0)),
            scratch_shapes=[pltpu.VMEM((tb, dp_out), jnp.float32)],
        )
        kernel = mlp_hidden_split_kernel
        dim_sem = ("parallel", "arbitrary")

    out_padded = pl.pallas_call(
        kernel,
        out_shape=jax.ShapeDtypeStruct((bp, dp_out), out_dtype),
        grid_spec=grid_spec,
        compiler_params=pltpu.CompilerParams(
            dimension_semantics=dim_sem,
            vmem_limit_bytes=int(vmem_limit)),
        cost_estimate=cost,
    )(xp, w1p, b1p, w2p, b2p)

    # Strip padding only when there is any (output dtype already matches x).
    out = out_padded if (bp == B and dp_out == D_out) else \
        out_padded[:B, :D_out]
    if len(orig_shape) != 2:
        out = out.reshape(*orig_shape[:-1], D_out)
    return out


def init_linear_params(key, fan_in, fan_out, dtype=jnp.float32):
    """PyTorch-style nn.Linear init: U(-1/sqrt(fan_in), 1/sqrt(fan_in)).
    Weight stored transposed vs torch ([in, out]) so the kernel does x @ W."""
    kw, kb = jax.random.split(key)
    bound = 1.0 / (fan_in ** 0.5)
    w = jax.random.uniform(kw, (fan_in, fan_out), dtype, minval=-bound,
                           maxval=bound)
    b = jax.random.uniform(kb, (1, fan_out), dtype, minval=-bound,
                           maxval=bound)
    return w, b


if __name__ == "__main__":
    key = jax.random.PRNGKey(0)
    kx, k1, k2, kx2, k3, k4 = jax.random.split(key, 6)

    def _quantized_ref(x, w1, b1, w2, b2):
        # Same bf16 quantization of the MXU operands as the kernel
        # (f32 accumulation, f32 bias-add / ReLU), so the check is tight.
        xe = x.astype(jnp.bfloat16).astype(jnp.float32)
        w1e = w1.astype(jnp.bfloat16).astype(jnp.float32)
        w2e = w2.astype(jnp.bfloat16).astype(jnp.float32)
        h = jnp.maximum(xe @ w1e + b1, 0.0)
        return h.astype(jnp.bfloat16).astype(jnp.float32) @ w2e + b2

    # ---- config 1: module defaults (whole-hidden fused kernel path) --------
    input_dim, hidden_dim, output_dim = 16, 32, 16
    batch = 16
    x = jax.random.normal(kx, (batch, input_dim), jnp.float32)
    w1, b1 = init_linear_params(k1, input_dim, hidden_dim)
    w2, b2 = init_linear_params(k2, hidden_dim, output_dim)

    params = prepare_params(w1, b1, w2, b2)   # pad/cast once, reuse per call
    out = jax.block_until_ready(ot_map_nn_forward(x, params))
    assert out.shape == (batch, output_dim)
    assert out.dtype == x.dtype
    ref = _quantized_ref(x, w1, b1, w2, b2)
    assert jnp.allclose(out, ref, atol=1e-3, rtol=1e-3), \
        float(jnp.max(jnp.abs(out - ref)))
    ref_f32 = jnp.maximum(x @ w1 + b1, 0.0) @ w2 + b2
    assert jnp.allclose(out, ref_f32, atol=5e-2, rtol=5e-2)

    # ---- config 2: exercise the hidden-dim split (reduction) kernel path ---
    in2, hid2, out2, batch2 = 16, 256, 16, 8
    x2 = jax.random.normal(kx2, (batch2, in2), jnp.float32)
    w1s, b1s = init_linear_params(k3, in2, hid2)
    w2s, b2s = init_linear_params(k4, hid2, out2)
    params2 = prepare_params(w1s, b1s, w2s, b2s)
    out_split = jax.block_until_ready(
        ot_map_nn_forward(x2, params2, hidden_chunk=128))
    assert out_split.shape == (batch2, out2)
    ref2 = _quantized_ref(x2, w1s, b1s, w2s, b2s)
    assert jnp.allclose(out_split, ref2, atol=1e-3, rtol=1e-3), \
        float(jnp.max(jnp.abs(out_split - ref2)))

    print("KERNEL_OK")
</pallas_src>

<mosaic_0001>
module attributes {stable_mosaic.version = 11 : i64} {
  func.func @mlp_kernel(%arg0: i32, %arg1: memref<16x128xbf16, #tpu.memory_space<vmem>>, %arg2: memref<128x128xbf16, #tpu.memory_space<vmem>>, %arg3: memref<1x128xf32, #tpu.memory_space<vmem>>, %arg4: memref<128x128xbf16, #tpu.memory_space<vmem>>, %arg5: memref<1x128xf32, #tpu.memory_space<vmem>>, %arg6: memref<16x128xf32, #tpu.memory_space<vmem>>) attributes {dimension_semantics = [#tpu.dimension_semantics<parallel>], iteration_bounds = array<i64: 1>, scalar_prefetch = 0 : i64, scratch_operands = 0 : i64, tpu.core_type = #tpu.core_type<tc>, window_params = [{transform_indices = @transform_0, window_bounds = array<i64: 16, 128>}, {pipeline_mode = #tpu.pipeline_mode<synchronous>, transform_indices = @transform_1, window_bounds = array<i64: 128, 128>}, {pipeline_mode = #tpu.pipeline_mode<synchronous>, transform_indices = @transform_2, window_bounds = array<i64: 1, 128>}, {pipeline_mode = #tpu.pipeline_mode<synchronous>, transform_indices = @transform_3, window_bounds = array<i64: 128, 128>}, {pipeline_mode = #tpu.pipeline_mode<synchronous>, transform_indices = @transform_4, window_bounds = array<i64: 1, 128>}, {transform_indices = @transform_5, window_bounds = array<i64: 16, 128>}]} {
    %c0 = arith.constant 0 : index
    %c0_0 = arith.constant 0 : index
    %0 = vector.load %arg1[%c0, %c0_0] : memref<16x128xbf16, #tpu.memory_space<vmem>>, vector<16x128xbf16>
    %c0_1 = arith.constant 0 : index
    %c0_2 = arith.constant 0 : index
    %1 = vector.load %arg2[%c0_1, %c0_2] : memref<128x128xbf16, #tpu.memory_space<vmem>>, vector<128x128xbf16>
    %cst = arith.constant dense<0.000000e+00> : vector<16x128xf32>
    %2 = tpu.matmul %0, %1, %cst {dimension_numbers = #tpu.dot_dimension_numbers<[1], [0], [0], [1], [0, 0, 1, 1], [], []>} : vector<16x128xbf16>, vector<128x128xbf16>, vector<16x128xf32> -> vector<16x128xf32>
    %c0_3 = arith.constant 0 : index
    %c0_4 = arith.constant 0 : index
    %3 = vector.load %arg3[%c0_3, %c0_4] : memref<1x128xf32, #tpu.memory_space<vmem>>, vector<1x128xf32>
    %4 = vector.broadcast %3 : vector<1x128xf32> to vector<16x128xf32>
    %5 = arith.addf %2, %4 : vector<16x128xf32>
    %cst_5 = arith.constant 0.000000e+00 : f32
    %6 = vector.broadcast %cst_5 : f32 to vector<16x128xf32>
    %7 = arith.maximumf %5, %6 : vector<16x128xf32>
    %8 = arith.truncf %7 : vector<16x128xf32> to vector<16x128xbf16>
    %c0_6 = arith.constant 0 : index
    %c0_7 = arith.constant 0 : index
    %9 = vector.load %arg4[%c0_6, %c0_7] : memref<128x128xbf16, #tpu.memory_space<vmem>>, vector<128x128xbf16>
    %cst_8 = arith.constant dense<0.000000e+00> : vector<16x128xf32>
    %10 = tpu.matmul %8, %9, %cst_8 {dimension_numbers = #tpu.dot_dimension_numbers<[1], [0], [0], [1], [0, 0, 1, 1], [], []>} : vector<16x128xbf16>, vector<128x128xbf16>, vector<16x128xf32> -> vector<16x128xf32>
    %c0_9 = arith.constant 0 : index
    %c0_10 = arith.constant 0 : index
    %11 = vector.load %arg5[%c0_9, %c0_10] : memref<1x128xf32, #tpu.memory_space<vmem>>, vector<1x128xf32>
    %12 = vector.broadcast %11 : vector<1x128xf32> to vector<16x128xf32>
    %13 = arith.addf %10, %12 : vector<16x128xf32>
    %c0_11 = arith.constant 0 : index
    %c0_12 = arith.constant 0 : index
    %14 = vector.load %arg6[%c0_11, %c0_12] : memref<16x128xf32, #tpu.memory_space<vmem>>, vector<16x128xf32>
    tpu.vector_store %arg6[%c0_11, %c0_12], %13 {strides = array<i32>} : memref<16x128xf32, #tpu.memory_space<vmem>>, vector<16x128xf32>,
    return
  }
  func.func @transform_0(%arg0: i32) -> (i32, i32) {
    %c0_i32 = arith.constant 0 : i32
    %c0_i32_0 = arith.constant 0 : i32
    return %arg0, %c0_i32 : i32, i32
  }
  func.func @transform_1(%arg0: i32) -> (i32, i32) {
    %c0_i32 = arith.constant 0 : i32
    %c0_i32_0 = arith.constant 0 : i32
    %c0_i32_1 = arith.constant 0 : i32
    return %c0_i32, %c0_i32_0 : i32, i32
  }
  func.func @transform_2(%arg0: i32) -> (i32, i32) {
    %c0_i32 = arith.constant 0 : i32
    %c0_i32_0 = arith.constant 0 : i32
    %c0_i32_1 = arith.constant 0 : i32
    return %c0_i32, %c0_i32_0 : i32, i32
  }
  func.func @transform_3(%arg0: i32) -> (i32, i32) {
    %c0_i32 = arith.constant 0 : i32
    %c0_i32_0 = arith.constant 0 : i32
    %c0_i32_1 = arith.constant 0 : i32
    return %c0_i32, %c0_i32_0 : i32, i32
  }
  func.func @transform_4(%arg0: i32) -> (i32, i32) {
    %c0_i32 = arith.constant 0 : i32
    %c0_i32_0 = arith.constant 0 : i32
    %c0_i32_1 = arith.constant 0 : i32
    return %c0_i32, %c0_i32_0 : i32, i32
  }
  func.func @transform_5(%arg0: i32) -> (i32, i32) {
    %c0_i32 = arith.constant 0 : i32
    %c0_i32_0 = arith.constant 0 : i32
    return %arg0, %c0_i32 : i32, i32
  }
}

</mosaic_0001>

<bundles_post_ra>
// kernel: tpu_custom_call.1
= control target key start
LH: loop header
LB: loop body
LE: loop exit
PB: predicated region body
PF: predicated region fallthrough
CT: control target
= control target key end

     0   :  { %10 = vsyncpa [#allocation3], 0  ;;  %s518_s0 = inlined_call_operand.hbm [shape: bf16[16,128], index: 0, kind: input, shape index: {}]   ;;  %s519_s1 = inlined_call_operand.hbm [shape: bf16[128,128], index: 1, kind: input, shape index: {}]   ;;  %s520_s2 = inlined_call_operand.vmem [shape: f32[1,128], index: 2, kind: input, shape index: {}]   ;;  %s521_s3 = inlined_call_operand.hbm [shape: bf16[128,128], index: 3, kind: input, shape index: {}]   ;;  %s522_s4 = inlined_call_operand.vmem [shape: f32[1,128], index: 4, kind: input, shape index: {}]   ;;  %s523_s5 = inlined_call_operand.hbm [shape: f32[16,128], index: 5, kind: output, shape index: {}]  }
   0x1   :  { %11 = vsyncpa [#allocation6], 0 }
   0x2   :  { %12 = vsyncpa [#allocation4], 0  ;;  %s30_s20 = sshll.u32 %s519_s1, 4  ;;  %s462_s21 = smov [#allocation5]   ;;  %s31_s20 = int_to_ptr.hbm [resolvable:$true] %s30_s20 }
   0x3   :  { %s32_s22 = sshll.u32 %s462_s21, 4  ;;  %s17_s25 = sshll.u32 %s518_s0, 4  ;;  %s33_s22 = int_to_ptr.vmem [resolvable:$true] %s32_s22  ;;  %s18_s25 = int_to_ptr.hbm [resolvable:$true] %s17_s25 }
   0x4   :  { %s463_s26 = smov 64   ;;  %s464_s27 = smov 4  }
   0x5   :  { %38 = dma.hbm_to_vmem [thread:$0]  %s31_s20, 1024, %s33_s22, [#allocation6], %s463_s26, %s463_s26, %s464_s27  }
   0x6   :  { %s465_s28 = smov [#allocation2]   ;;  %s45_s7 = sshll.u32 %s521_s3, 4  ;;  %s46_s7 = int_to_ptr.hbm [resolvable:$true] %s45_s7 }
   0x7   :  { %s19_s29 = sshll.u32 %s465_s28, 4  ;;  %s466_s1 = smov [#allocation7]   ;;  %s20_s29 = int_to_ptr.vmem [resolvable:$true] %s19_s29 }
   0x8   :  { %25 = dma.hbm_to_vmem [thread:$0]  %s18_s25, 128, %s20_s29, [#allocation3], %s463_s26, %s463_s26, %s464_s27  }
   0x9   :  { %s47_s8 = sshll.u32 %s466_s1, 4  ;;  %s48_s8 = int_to_ptr.vmem [resolvable:$true] %s47_s8 }
   0xa   :  { %53 = dma.hbm_to_vmem [thread:$0]  %s46_s7, 1024, %s48_s8, [#allocation6], %s463_s26, %s463_s26, %s464_s27  }
   0xb   :  { %456 = dma.done.wait [#allocation3], 128  }
   0xc   :  { %457 = vsyncadd [#allocation3], 4294967168 }
   0xd   :  { %458 = dma.done.wait [#allocation6], 2048  }
   0xe   :  { %459 = vsyncadd [#allocation6], 4294965248  ;;  %v341_v0 = vld [vmem:[#allocation5 + $0x38] sm:$0xff]  ;;  %v340_v1 = vld [vmem:[#allocation5 + $0x30] sm:$0xff]  ;;  %s467_s11 = smov [#allocation8]   ;;  %s468_s15 = smov 128  }
   0xf   :  { %144 = vmatpush.bf16.msra.mxu0 %v341_v0  ;;  %v349_v2 = vld [vmem:[#allocation7 + $0x38] sm:$0xff]  ;;  %v348_v3 = vld [vmem:[#allocation7 + $0x30] sm:$0xff]  ;;  %v339_v4 = vld [vmem:[#allocation5 + $0x28] sm:$0xff]  ;;  %s249_s12 = sshll.u32 %s467_s11, 4  ;;  %s469_s16 = smov 8   ;;  %s250_s12 = int_to_ptr.vmem [resolvable:$true] %s249_s12 }
  0x10   :  { %229 = vmatpush.bf16.msra.mxu1 %v349_v2  ;;  %v347_v5 = vld [vmem:[#allocation7 + $0x28] sm:$0xff]  ;;  %v338_v6 = vld [vmem:[#allocation5 + $0x20] sm:$0xff]  ;;  %v337_v8 = vld [vmem:[#allocation5 + $0x18] sm:$0xff] }
  0x11   :  { %v346_v7 = vld [vmem:[#allocation7 + $0x20] sm:$0xff]  ;;  %v336_v9 = vld [vmem:[#allocation5 + $0x10] sm:$0xff]  ;;  %v335_v10 = vld [vmem:[#allocation5 + $0x8] sm:$0xff] }
  0x12   :  { %v334_v11 = vld [vmem:[#allocation5] sm:$0xff]  ;;  %v333_v12 = vld [vmem:[#allocation2] sm:$0xff]  ;;  %v344_v14 = vld [vmem:[#allocation7 + $0x10] sm:$0xff] }
  0x13   :  { %145 = vmatpush.bf16.msra.mxu0 %v340_v1  ;;  %v345_v13 = vld [vmem:[#allocation7 + $0x18] sm:$0xff]  ;;  %v343_v15 = vld [vmem:[#allocation7 + $0x8] sm:$0xff]  ;;  %v342_v16 = vld [vmem:[#allocation7] sm:$0xff] }
  0x14   :  { %230 = vmatpush.bf16.msra.mxu1 %v348_v3  ;;  %v358_v18 = vld [vmem:[%s520_s2] ss:$0 sm:$0xff]  ;;  %s251_s2 = sshll.u32 %s523_s5, 4  ;;  %s252_s2 = int_to_ptr.hbm [resolvable:$true] %s251_s2 }
  0x15   :  { %v359_v25 = vld [vmem:[%s522_s4] ss:$0 sm:$0xff] }
  0x17   :  { %146 = vmatpush.bf16.msra.mxu0 %v339_v4 }
  0x18   :  { %231 = vmatpush.bf16.msra.mxu1 %v347_v5 }
  0x1b   :  { %147 = vmatpush.bf16.msra.mxu0 %v338_v6 }
  0x1c   :  { %232 = vmatpush.bf16.msra.mxu1 %v346_v7 }
  0x1f   :  { %148 = vmatpush.bf16.msra.mxu0 %v337_v8 }
  0x20   :  { %233 = vmatpush.bf16.msra.mxu1 %v345_v13 }
  0x23   :  { %149 = vmatpush.bf16.msra.mxu0 %v336_v9 }
  0x24   :  { %234 = vmatpush.bf16.msra.mxu1 %v344_v14 }
  0x27   :  { %150 = vmatpush.bf16.msra.mxu0 %v335_v10 }
  0x28   :  { %235 = vmatpush.bf16.msra.mxu1 %v343_v15 }
  0x2b   :  { %151 = vmatpush.bf16.msra.mxu0 %v334_v11 }
  0x2c   :  { %236 = vmatpush.bf16.msra.mxu1 %v342_v16 }
  0x2e   :  { %152 = vmatmul.bf16.vlgmr.msra.gmra.mxu0 %v333_v12 }
  0xab   :  { %v153_v17 = vpop.f32.mrf.mxu0 }
  0xac   :  { %v154_v19 = vadd.f32 %v358_v18, %v153_v17 }
  0xae   :  { %v158_v22 = vmax.f32 %v154_v19, 0.0 }
  0xb3   :  { %v155_v20 = vpop.f32.mrf.mxu0 }
  0xb4   :  { %v156_v21 = vadd.f32 %v358_v18, %v155_v20 }
  0xb6   :  { %v159_v23 = vmax.f32 %v156_v21, 0.0 }
  0xb8   :  { %v160_v24 = vpack.c.bf16 %v159_v23, %v158_v22 }
  0xba   :  { %237 = vmatmul.bf16.vlgmr.msra.gmra.mxu1 %v160_v24 }
 0x137   :  { %v238_v26 = vpop.f32.mrf.mxu1 }
 0x138   :  { %v239_v27 = vadd.f32 %v359_v25, %v238_v26 }
 0x13a   :  { %243 = vst [vmem:[#allocation8] sm:$0xff] %v239_v27 }
 0x13f   :  { %v240_v28 = vpop.f32.mrf.mxu1 }
 0x140   :  { %v241_v29 = vadd.f32 %v359_v25, %v240_v28 }
 0x142   :  { %244 = vst [vmem:[#allocation8 + $0x8] sm:$0xff] %v241_v29 }
 0x143   :  { %257 = dma.vmem_to_hbm [thread:$0]  %s250_s12, 256, %s252_s2, [#allocation4], %s468_s15, %s468_s15, %s469_s16  }
 0x144   :  { %460 = dma.done.wait [#allocation4], 256  }
 0x145   :  { %461 = vsyncadd [#allocation4], 4294967040 }
 0x146   :  { %262 = vsyncpa [#allocation3], 1 }
 0x147   :  { %263 = vsyncpa [#allocation6], 1 }
 0x148   :  { %264 = vsyncpa [#allocation4], 1 }

</bundles_post_ra>
